<compile_context>
chip_gen: v6e
topology: v6e:2x2x1
jax: 0.10.0
libtpu: 0.0.40
codegen_flags: <defaults>
</compile_context>

<pallas_src>
import functools

import jax
import jax.numpy as jnp
from jax.experimental import pallas as pl
from jax.experimental.pallas import tpu as pltpu

REGION_NUM_ = 4   # region_num R


# ----------------------------------------------------------------------------
# Pallas kernel 1: layer-1 DRConv hot path for one (sample, spatial-tile) block.
#   xp_ref : (1, 9*Cin,   T) bf16  im2col patches of x       (K on sublanes, HW tile on lanes)
#   hp_ref : (1, 9*Chist, T) bf16  im2col patches of histmap
#   dk_ref : (1, R*Cout, 9*Cin) bf16  per-sample dynamic kernel (pre-transposed in wrapper)
#   gw_ref : (2R, 9*Chist) bf16    guide-conv weights [layer1; layer2]
#   gb_ref : (2R, 1) f32           guide-conv biases  [layer1; layer2]
#   y_ref  : (1, Cout, T) bf16     region-selected (pre-BN) output
#   gf1_ref: (1, R, T) bf16        layer-1 guide features (pre-argmax)
#   gf2_ref: (1, R, T) bf16        layer-2 guide features (reused by kernel 2)
#   st_ref : (1, 2*Cout, 1) f32    per-sample [sum; sumsq] BN partials, accumulated over j
# ----------------------------------------------------------------------------
def drconv1_kernel(xp_ref, hp_ref, dk_ref, gw_ref, gb_ref,
                   y_ref, gf1_ref, gf2_ref, st_ref, *, R, Cout):
    @pl.when(pl.program_id(1) == 0)
    def _():
        st_ref[...] = jnp.zeros_like(st_ref)

    xp = xp_ref[0]                                   # (9*Cin,   T) bf16
    hp = hp_ref[0]                                   # (9*Chist, T) bf16

    # one fused correlation matmul (K = 9*Cin) + one guide matmul for BOTH layers (K = 9*Chist)
    acc = jnp.dot(dk_ref[0], xp, preferred_element_type=jnp.float32)     # (R*Cout, T) f32
    g = jnp.dot(gw_ref[...], hp, preferred_element_type=jnp.float32)     # (2R, T)     f32
    g = g + gb_ref[...]
    g1 = g[:R, :]                                    # layer-1 guide features
    g2 = g[R:, :]                                    # layer-2 guide features (reused later)

    # per-pixel region index = argmax over regions (first max on ties, torch.scatter_ style)
    m = jnp.max(g1, axis=0, keepdims=True)
    r_iota = jax.lax.broadcasted_iota(jnp.int32, g1.shape, 0)
    idx = jnp.min(jnp.where(g1 >= m, r_iota, R), axis=0, keepdims=True)  # (1, T)

    # region select: static, sublane-friendly Cout-row slices; one where+add per region
    out = jnp.zeros((Cout, acc.shape[1]), jnp.float32)
    for r in range(R):
        out = out + jnp.where(idx == r, acc[r * Cout:(r + 1) * Cout, :], 0.0)

    y_ref[0] = out.astype(y_ref.dtype)
    gf1_ref[0] = g1.astype(gf1_ref.dtype)
    gf2_ref[0] = g2.astype(gf2_ref.dtype)

    # BN partial statistics accumulated in the resident output block (written once per sample)
    s1 = jnp.sum(out, axis=1, keepdims=True)                             # (Cout, 1)
    s2 = jnp.sum(out * out, axis=1, keepdims=True)                       # (Cout, 1)
    st_ref[0] = st_ref[0] + jnp.concatenate([s1, s2], axis=0)


# ----------------------------------------------------------------------------
# Pallas kernel 2: layer-2 DRConv — reads precomputed guide features (no hist re-read).
#   xp_ref : (1, 9*Cmid, T) bf16   im2col patches of BN+ReLU'd y1
#   gf_ref : (1, R, T) bf16        precomputed layer-2 guide features
#   dk_ref : (1, R*Cout, 9*Cmid) bf16
#   y_ref  : (1, Cout, T) bf16     pre-BN output
#   st_ref : (1, 2*Cout, 1) f32    BN partials (accumulated over j)
# ----------------------------------------------------------------------------
def drconv2_kernel(xp_ref, gf_ref, dk_ref, y_ref, st_ref, *, R, Cout):
    @pl.when(pl.program_id(1) == 0)
    def _():
        st_ref[...] = jnp.zeros_like(st_ref)

    acc = jnp.dot(dk_ref[0], xp_ref[0], preferred_element_type=jnp.float32)  # (R*Cout, T)
    g = gf_ref[0].astype(jnp.float32)                                        # (R, T)

    m = jnp.max(g, axis=0, keepdims=True)
    r_iota = jax.lax.broadcasted_iota(jnp.int32, g.shape, 0)
    idx = jnp.min(jnp.where(g >= m, r_iota, R), axis=0, keepdims=True)

    out = jnp.zeros((Cout, acc.shape[1]), jnp.float32)
    for r in range(R):
        out = out + jnp.where(idx == r, acc[r * Cout:(r + 1) * Cout, :], 0.0)

    y_ref[0] = out.astype(y_ref.dtype)

    s1 = jnp.sum(out, axis=1, keepdims=True)
    s2 = jnp.sum(out * out, axis=1, keepdims=True)
    st_ref[0] = st_ref[0] + jnp.concatenate([s1, s2], axis=0)


# ----------------------------------------------------------------------------
# Pallas kernel 3: BatchNorm apply (precomputed per-channel scale/shift) + ReLU.
# Lane-dense: y block is (1, C, T) with the HW tile on the lane axis; bf16 in, f32 out.
# ----------------------------------------------------------------------------
def bn_relu_kernel(y_ref, sc_ref, sh_ref, o_ref):
    o_ref[0] = jnp.maximum(y_ref[0].astype(jnp.float32) * sc_ref[...] + sh_ref[...], 0.0)


# ----------------------------------------------------------------------------
# Wrapper helpers (plain JAX glue; all tiny or fused producer ops)
# ----------------------------------------------------------------------------
VMEM_LIMIT_BYTES = 48 * 1024 * 1024     # safe on v5e/v6e (128 MiB) and v7x (64 MiB) physical VMEM
TILE_CAP_LANES = 8192                   # lane-tile cap (per review: amortize ~0.35 us/step)
TILE_VMEM_BUDGET = 20 * 1024 * 1024     # double-buffered working-set budget for tile sizing


def round_up(x, m):
    return ((x + m - 1) // m) * m


def pick_hw_tile(hw_padded, bytes_per_lane):
    """Largest multiple of 128 <= min(hw_padded, cap) whose double-buffered working set
    stays under the VMEM budget (v7x-safe)."""
    by_vmem = TILE_VMEM_BUDGET // max(1, 2 * bytes_per_lane)
    t = min(hw_padded, TILE_CAP_LANES, by_vmem)
    return max(128, (t // 128) * 128)


def working_set_bytes_per_lane(Cin, Chist, Cmid, Cout, R):
    # bf16 streamed buffers + rough allowance for live f32 vregs/spills in the epilogue
    l1 = 2 * (9 * Cin + 9 * Chist + Cmid + 2 * R) + 4 * (R * Cmid + Cmid + 2 * R + 1)
    l2 = 2 * (9 * Cmid + R + Cout) + 4 * (R * Cout + Cout + R + 1)
    return max(l1, l2)


def im2col_T(x_nchw, hw_total, dtype=jnp.bfloat16):
    """(B, C, H, W) -> (B, 9*C, hw_total) bf16; row order = tap-major (t = dy*3+dx), then channel.
    Extra lanes (beyond H*W) are zero-padded, so they contribute 0 to conv outputs / BN sums."""
    B, C, H, W = x_nchw.shape
    xp = jnp.pad(x_nchw, ((0, 0), (0, 0), (1, 1), (1, 1)))
    taps = [xp[:, :, dy:dy + H, dx:dx + W].reshape(B, C, H * W)
            for dy in range(3) for dx in range(3)]
    out = jnp.concatenate(taps, axis=1).astype(dtype)
    if hw_total > H * W:
        out = jnp.pad(out, ((0, 0), (0, 0), (0, hw_total - H * W)))
    return out


def adaptive_avg_pool_nchw(x, o):
    B, C, H, W = x.shape
    hs = [(i * H) // o for i in range(o)]
    he = [-(-((i + 1) * H) // o) for i in range(o)]
    ws = [(j * W) // o for j in range(o)]
    we = [-(-((j + 1) * W) // o) for j in range(o)]
    rows = []
    for i in range(o):
        cols = [jnp.mean(x[:, :, hs[i]:he[i], ws[j]:we[j]], axis=(2, 3)) for j in range(o)]
        rows.append(jnp.stack(cols, axis=-1))       # (B, C, o)
    return jnp.stack(rows, axis=-2)                 # (B, C, o, o)


def dyn_kernel_weights(x_nchw, p, R):
    """Per-sample dynamic kernel: GroupedConv1x1(sigmoid(Conv1x1(AdaptiveAvgPool3x3(x)))).
    Returns (B, R*Cout, 9*Cin) bf16 with columns ordered (ky*3+kx)*Cin + cin."""
    B, Cin = x_nchw.shape[0], x_nchw.shape[1]
    Cout = p["Cout"]
    pooled = jnp.transpose(adaptive_avg_pool_nchw(x_nchw, 3), (0, 2, 3, 1))   # (B,3,3,Cin)
    t = jnp.einsum("bhwc,oc->bhwo", pooled, p["W1"]) + p["b1"]                # (B,3,3,R*R)
    t = jax.nn.sigmoid(t).reshape(B, 3, 3, R, R)                              # (..., group, in-in-group)
    W2g = p["W2"].reshape(R, Cin * Cout, R)                                   # (group, out-in-group, in-in-group)
    k = jnp.einsum("bhwgi,goi->bhwgo", t, W2g) + p["b2"].reshape(R, Cin * Cout)
    k = k.reshape(B, 3, 3, R, Cout, Cin)                                      # PyTorch view order (r, cout, cin)
    dker = jnp.transpose(k, (0, 3, 4, 1, 2, 5)).reshape(B, R * Cout, 9 * Cin)
    return dker.astype(jnp.bfloat16)


def guide_wb(p, Chist):
    R = p["Wg"].shape[0]
    gw = jnp.transpose(p["Wg"], (0, 2, 3, 1)).reshape(R, 9 * Chist).astype(jnp.bfloat16)
    gb = p["bg"].reshape(R, 1).astype(jnp.float32)
    return gw, gb


def bn_affine(stats, p, count, C):
    """Fold training-mode BatchNorm (biased var, eps=1e-5) into per-channel scale/shift."""
    s1 = jnp.sum(stats[:, :C, 0], axis=0)          # (C,)
    s2 = jnp.sum(stats[:, C:, 0], axis=0)
    mean = s1 / count
    var = jnp.maximum(s2 / count - mean * mean, 0.0)   # guard tiny negative from cancellation
    inv = jax.lax.rsqrt(var + 1e-5)
    scale = p["gamma"] * inv
    shift = p["beta"] - mean * scale
    return scale, shift


# ----------------------------------------------------------------------------
# pallas_call wrappers
# ----------------------------------------------------------------------------
def drconv_layer1(xpat, hpat, dker, gwcat, gbcat, R, Cout, tile):
    B, K9cin, HWt = xpat.shape
    K9h = hpat.shape[1]
    nt = HWt // tile
    kernel = functools.partial(drconv1_kernel, R=R, Cout=Cout)
    return pl.pallas_call(
        kernel,
        out_shape=(jax.ShapeDtypeStruct((B, Cout, HWt), jnp.bfloat16),
                   jax.ShapeDtypeStruct((B, R, HWt), jnp.bfloat16),
                   jax.ShapeDtypeStruct((B, R, HWt), jnp.bfloat16),
                   jax.ShapeDtypeStruct((B, 2 * Cout, 1), jnp.float32)),
        grid=(B, nt),
        in_specs=[
            pl.BlockSpec((1, K9cin, tile), lambda b, j: (b, 0, j)),
            pl.BlockSpec((1, K9h, tile), lambda b, j: (b, 0, j)),
            pl.BlockSpec((1, R * Cout, K9cin), lambda b, j: (b, 0, 0)),
            pl.BlockSpec((2 * R, K9h), lambda b, j: (0, 0)),
            pl.BlockSpec((2 * R, 1), lambda b, j: (0, 0)),
        ],
        out_specs=(
            pl.BlockSpec((1, Cout, tile), lambda b, j: (b, 0, j)),
            pl.BlockSpec((1, R, tile), lambda b, j: (b, 0, j)),
            pl.BlockSpec((1, R, tile), lambda b, j: (b, 0, j)),
            pl.BlockSpec((1, 2 * Cout, 1), lambda b, j: (b, 0, 0)),
        ),
        compiler_params=pltpu.CompilerParams(
            dimension_semantics=("parallel", "arbitrary"),   # j accumulates BN stats
            vmem_limit_bytes=VMEM_LIMIT_BYTES),
    )(xpat, hpat, dker, gwcat, gbcat)


def drconv_layer2(xpat, gf2, dker, R, Cout, tile):
    B, K9c, HWt = xpat.shape
    nt = HWt // tile
    kernel = functools.partial(drconv2_kernel, R=R, Cout=Cout)
    return pl.pallas_call(
        kernel,
        out_shape=(jax.ShapeDtypeStruct((B, Cout, HWt), jnp.bfloat16),
                   jax.ShapeDtypeStruct((B, 2 * Cout, 1), jnp.float32)),
        grid=(B, nt),
        in_specs=[
            pl.BlockSpec((1, K9c, tile), lambda b, j: (b, 0, j)),
            pl.BlockSpec((1, R, tile), lambda b, j: (b, 0, j)),
            pl.BlockSpec((1, R * Cout, K9c), lambda b, j: (b, 0, 0)),
        ],
        out_specs=(
            pl.BlockSpec((1, Cout, tile), lambda b, j: (b, 0, j)),
            pl.BlockSpec((1, 2 * Cout, 1), lambda b, j: (b, 0, 0)),
        ),
        compiler_params=pltpu.CompilerParams(
            dimension_semantics=("parallel", "arbitrary"),
            vmem_limit_bytes=VMEM_LIMIT_BYTES),
    )(xpat, gf2, dker)


def bn_relu(y_flat, scale, shift, tile):
    B, C, HWt = y_flat.shape
    return pl.pallas_call(
        bn_relu_kernel,
        out_shape=jax.ShapeDtypeStruct((B, C, HWt), jnp.float32),
        grid=(B, HWt // tile),
        in_specs=[
            pl.BlockSpec((1, C, tile), lambda b, j: (b, 0, j)),
            pl.BlockSpec((C, 1), lambda b, j: (0, 0)),
            pl.BlockSpec((C, 1), lambda b, j: (0, 0)),
        ],
        out_specs=pl.BlockSpec((1, C, tile), lambda b, j: (b, 0, j)),
        compiler_params=pltpu.CompilerParams(
            dimension_semantics=("parallel", "parallel"),
            vmem_limit_bytes=VMEM_LIMIT_BYTES),
    )(y_flat, scale.reshape(C, 1), shift.reshape(C, 1))


# ----------------------------------------------------------------------------
# Top-level forward (NCHW in / NCHW out, matching the PyTorch module)
# ----------------------------------------------------------------------------
def hist_guided_dr_double_conv(x_nchw, hist_nchw, params):
    R = REGION_NUM_
    B, Cin, H, W = x_nchw.shape
    HW = H * W
    Chist = hist_nchw.shape[1]
    Cmid = params["conv1"]["Cout"]
    Cout = params["conv2"]["Cout"]

    # lane tiling: pad flattened spatial to a multiple of 128 and to a multiple of the tile
    bpl = working_set_bytes_per_lane(Cin, Chist, Cmid, Cout, R)
    HWp = round_up(HW, 128)
    tile = pick_hw_tile(HWp, bpl)
    HWt = round_up(HWp, tile)

    # ---- layer 1: DRConv2d(in -> mid) ----
    hpat = im2col_T(hist_nchw, HWt)                           # (B, 9*Chist, HWt) bf16
    xpat1 = im2col_T(x_nchw, HWt)                             # (B, 9*Cin,   HWt) bf16
    dk1 = dyn_kernel_weights(x_nchw, params["conv1"], R)      # (B, R*Cmid, 9*Cin) bf16
    gw1, gb1 = guide_wb(params["conv1"], Chist)
    gw2, gb2 = guide_wb(params["conv2"], Chist)
    gwcat = jnp.concatenate([gw1, gw2], axis=0)               # (2R, 9*Chist) bf16
    gbcat = jnp.concatenate([gb1, gb2], axis=0)               # (2R, 1) f32

    y1, gf1, gf2, st1 = drconv_layer1(xpat1, hpat, dk1, gwcat, gbcat, R, Cmid, tile)

    # BN1 (training-mode batch stats) folded into scale/shift; apply + ReLU is fused by XLA
    # into the layer-2 im2col / pooling producers (no standalone Pallas BN pass over y1).
    sc1, sh1 = bn_affine(st1, params["bn1"], count=float(B * HW), C=Cmid)
    y1n = jnp.maximum(
        y1[:, :, :HW].astype(jnp.float32).reshape(B, Cmid, H, W)
        * sc1[None, :, None, None] + sh1[None, :, None, None], 0.0)

    # ---- layer 2: DRConv2d(mid -> out); guide features gf2 were computed in layer 1 ----
    xpat2 = im2col_T(y1n, HWt)                                # (B, 9*Cmid, HWt) bf16
    dk2 = dyn_kernel_weights(y1n, params["conv2"], R)         # (B, R*Cout, 9*Cmid) bf16

    y2, st2 = drconv_layer2(xpat2, gf2, dk2, R, Cout, tile)

    sc2, sh2 = bn_affine(st2, params["bn2"], count=float(B * HW), C=Cout)
    out = bn_relu(y2, sc2, sh2, tile)[:, :, :HW].reshape(B, Cout, H, W)

    guide_features = [gf1[:, :, :HW].astype(jnp.float32).reshape(B, R, H, W),
                      gf2[:, :, :HW].astype(jnp.float32).reshape(B, R, H, W)]
    return out, guide_features


# ----------------------------------------------------------------------------
# Deterministic parameter init (shapes per DRConv2d / BatchNorm2d __init__)
# ----------------------------------------------------------------------------
def init_drconv_params(key, Cin, Cout, R, Chist, scale=0.1):
    ks = jax.random.split(key, 6)
    return dict(
        W1=scale * jax.random.normal(ks[0], (R * R, Cin), jnp.float32),         # Conv2d(Cin, R*R, 1)
        b1=scale * jax.random.normal(ks[1], (R * R,), jnp.float32),
        W2=scale * jax.random.normal(ks[2], (R * Cin * Cout, R), jnp.float32),  # Conv2d(R*R, R*Cin*Cout, 1, groups=R)
        b2=scale * jax.random.normal(ks[3], (R * Cin * Cout,), jnp.float32),
        Wg=scale * jax.random.normal(ks[4], (R, Chist, 3, 3), jnp.float32),     # Conv2d(Chist, R, 3, padding=1)
        bg=scale * jax.random.normal(ks[5], (R,), jnp.float32),
        Cout=Cout,
    )


if __name__ == "__main__":
    key = jax.random.PRNGKey(0)
    B, Cin, H, W = 2, 4, 16, 16
    Cmid = Cout = 8
    Chist = 8       # histmap channels (guide_input_channel)
    R = REGION_NUM_

    k1, k2, k3, k4 = jax.random.split(key, 4)
    x = jax.random.normal(k1, (B, Cin, H, W), jnp.float32)
    histmap = jax.random.uniform(k2, (B, Chist, H, W), jnp.float32)

    params = dict(
        conv1=init_drconv_params(k3, Cin, Cmid, R, Chist),
        bn1=dict(gamma=jnp.ones((Cmid,), jnp.float32), beta=jnp.zeros((Cmid,), jnp.float32)),
        conv2=init_drconv_params(k4, Cmid, Cout, R, Chist),
        bn2=dict(gamma=jnp.ones((Cout,), jnp.float32), beta=jnp.zeros((Cout,), jnp.float32)),
    )

    out, guide_features = hist_guided_dr_double_conv(x, histmap, params)
    jax.block_until_ready(out)
    assert out.shape == (B, Cout, H, W)
    assert guide_features[0].shape == (B, R, H, W) and guide_features[1].shape == (B, R, H, W)
    assert bool(jnp.all(jnp.isfinite(out)))
    print("KERNEL_OK")
</pallas_src>

<mosaic_0001>
module attributes {stable_mosaic.version = 11 : i64} {
  func.func @drconv1_kernel(%arg0: i32, %arg1: i32, %arg2: memref<1x36x256xbf16, #tpu.memory_space<vmem>>, %arg3: memref<1x72x256xbf16, #tpu.memory_space<vmem>>, %arg4: memref<1x32x36xbf16, #tpu.memory_space<vmem>>, %arg5: memref<8x72xbf16, #tpu.memory_space<vmem>>, %arg6: memref<8x1xf32, #tpu.memory_space<vmem>>, %arg7: memref<1x8x256xbf16, #tpu.memory_space<vmem>>, %arg8: memref<1x4x256xbf16, #tpu.memory_space<vmem>>, %arg9: memref<1x4x256xbf16, #tpu.memory_space<vmem>>, %arg10: memref<1x16x1xf32, #tpu.memory_space<vmem>>) attributes {dimension_semantics = [#tpu.dimension_semantics<parallel>, #tpu.dimension_semantics<arbitrary>], iteration_bounds = array<i64: 2, 1>, scalar_prefetch = 0 : i64, scratch_operands = 0 : i64, tpu.core_type = #tpu.core_type<tc>, window_params = [{transform_indices = @transform_0, window_bounds = array<i64: 1, 36, 256>}, {transform_indices = @transform_1, window_bounds = array<i64: 1, 72, 256>}, {transform_indices = @transform_2, window_bounds = array<i64: 1, 32, 36>}, {pipeline_mode = #tpu.pipeline_mode<synchronous>, transform_indices = @transform_3, window_bounds = array<i64: 8, 72>}, {pipeline_mode = #tpu.pipeline_mode<synchronous>, transform_indices = @transform_4, window_bounds = array<i64: 8, 1>}, {transform_indices = @transform_5, window_bounds = array<i64: 1, 8, 256>}, {transform_indices = @transform_6, window_bounds = array<i64: 1, 4, 256>}, {transform_indices = @transform_7, window_bounds = array<i64: 1, 4, 256>}, {transform_indices = @transform_8, window_bounds = array<i64: 1, 16, 1>}]} {
    %c0_i32 = arith.constant 0 : i32
    %0 = arith.cmpi eq, %arg1, %c0_i32 : i32
    %1 = arith.extui %0 : i1 to i32
    %c0_i32_0 = arith.constant 0 : i32
    %2 = arith.cmpi ne, %1, %c0_i32_0 : i32
    scf.if %2 {
      %cst_39 = arith.constant 0.000000e+00 : f32
      %83 = vector.broadcast %cst_39 : f32 to vector<1x16x1xf32>
      %c0_40 = arith.constant 0 : index
      %c0_41 = arith.constant 0 : index
      %c0_42 = arith.constant 0 : index
      %84 = vector.load %arg10[%c0_40, %c0_41, %c0_42] : memref<1x16x1xf32, #tpu.memory_space<vmem>>, vector<1x16x1xf32>
      tpu.vector_store %arg10[%c0_40, %c0_41, %c0_42], %83 {strides = array<i32>} : memref<1x16x1xf32, #tpu.memory_space<vmem>>, vector<1x16x1xf32>,
    } else {
    }
    %c0 = arith.constant 0 : index
    %c0_1 = arith.constant 0 : index
    %c0_2 = arith.constant 0 : index
    %3 = vector.load %arg2[%c0, %c0_1, %c0_2] : memref<1x36x256xbf16, #tpu.memory_space<vmem>>, vector<1x36x256xbf16>
    %4 = vector.shape_cast %3 : vector<1x36x256xbf16> to vector<36x256xbf16>
    %c0_3 = arith.constant 0 : index
    %c0_4 = arith.constant 0 : index
    %c0_5 = arith.constant 0 : index
    %5 = vector.load %arg3[%c0_3, %c0_4, %c0_5] : memref<1x72x256xbf16, #tpu.memory_space<vmem>>, vector<1x72x256xbf16>
    %6 = vector.shape_cast %5 : vector<1x72x256xbf16> to vector<72x256xbf16>
    %c0_6 = arith.constant 0 : index
    %c0_7 = arith.constant 0 : index
    %c0_8 = arith.constant 0 : index
    %7 = vector.load %arg4[%c0_6, %c0_7, %c0_8] : memref<1x32x36xbf16, #tpu.memory_space<vmem>>, vector<1x32x36xbf16>
    %8 = vector.shape_cast %7 : vector<1x32x36xbf16> to vector<32x36xbf16>
    %cst = arith.constant dense<0.000000e+00> : vector<32x256xf32>
    %9 = tpu.matmul %8, %4, %cst {dimension_numbers = #tpu.dot_dimension_numbers<[1], [0], [0], [1], [0, 0, 1, 1], [], []>} : vector<32x36xbf16>, vector<36x256xbf16>, vector<32x256xf32> -> vector<32x256xf32>
    %c0_9 = arith.constant 0 : index
    %c0_10 = arith.constant 0 : index
    %10 = vector.load %arg5[%c0_9, %c0_10] : memref<8x72xbf16, #tpu.memory_space<vmem>>, vector<8x72xbf16>
    %cst_11 = arith.constant dense<0.000000e+00> : vector<8x256xf32>
    %11 = tpu.matmul %10, %6, %cst_11 {dimension_numbers = #tpu.dot_dimension_numbers<[1], [0], [0], [1], [0, 0, 1, 1], [], []>} : vector<8x72xbf16>, vector<72x256xbf16>, vector<8x256xf32> -> vector<8x256xf32>
    %c0_12 = arith.constant 0 : index
    %c0_13 = arith.constant 0 : index
    %12 = vector.load %arg6[%c0_12, %c0_13] : memref<8x1xf32, #tpu.memory_space<vmem>>, vector<8x1xf32>
    %13 = vector.broadcast %12 : vector<8x1xf32> to vector<8x256xf32>
    %14 = arith.addf %11, %13 : vector<8x256xf32>
    %15 = vector.extract_strided_slice %14 {offsets = [0, 0], sizes = [4, 256], strides = [1, 1]} : vector<8x256xf32> to vector<4x256xf32>
    %16 = vector.extract_strided_slice %14 {offsets = [4, 0], sizes = [4, 256], strides = [1, 1]} : vector<8x256xf32> to vector<4x256xf32>
    %cst_14 = arith.constant dense<0xFF800000> : vector<256xf32>
    %17 = vector.multi_reduction <maximumf>, %15, %cst_14 [0] : vector<4x256xf32> to vector<256xf32>
    %18 = vector.shape_cast %17 : vector<256xf32> to vector<1x256xf32>
    %19 = tpu.iota {dimensions = array<i32: 0>} : vector<4x256xi32>
    %20 = vector.broadcast %18 : vector<1x256xf32> to vector<4x256xf32>
    %21 = arith.cmpf oge, %15, %20 : vector<4x256xf32>
    %c4_i32 = arith.constant 4 : i32
    %22 = vector.broadcast %c4_i32 : i32 to vector<4x256xi32>
    %23 = arith.select %21, %19, %22 : vector<4x256xi1>, vector<4x256xi32>
    %cst_15 = arith.constant dense<2147483647> : vector<256xi32>
    %24 = vector.multi_reduction <minsi>, %23, %cst_15 [0] : vector<4x256xi32> to vector<256xi32>
    %25 = vector.shape_cast %24 : vector<256xi32> to vector<1x256xi32>
    %cst_16 = arith.constant 0.000000e+00 : f32
    %26 = vector.broadcast %cst_16 : f32 to vector<8x256xf32>
    %c0_i32_17 = arith.constant 0 : i32
    %27 = vector.broadcast %c0_i32_17 : i32 to vector<1x256xi32>
    %28 = arith.cmpi eq, %25, %27 : vector<1x256xi32>
    %29 = vector.extract_strided_slice %9 {offsets = [0, 0], sizes = [8, 256], strides = [1, 1]} : vector<32x256xf32> to vector<8x256xf32>
    %cst_18 = arith.constant 0.000000e+00 : f32
    %30 = vector.shape_cast %28 : vector<1x256xi1> to vector<1x256xi1>
    %31 = vector.broadcast %30 : vector<1x256xi1> to vector<8x256xi1>
    %32 = vector.broadcast %cst_18 : f32 to vector<8x256xf32>
    %33 = arith.select %31, %29, %32 : vector<8x256xi1>, vector<8x256xf32>
    %34 = arith.addf %26, %33 : vector<8x256xf32>
    %c1_i32 = arith.constant 1 : i32
    %35 = vector.broadcast %c1_i32 : i32 to vector<1x256xi32>
    %36 = arith.cmpi eq, %25, %35 : vector<1x256xi32>
    %37 = vector.extract_strided_slice %9 {offsets = [8, 0], sizes = [8, 256], strides = [1, 1]} : vector<32x256xf32> to vector<8x256xf32>
    %cst_19 = arith.constant 0.000000e+00 : f32
    %38 = vector.shape_cast %36 : vector<1x256xi1> to vector<1x256xi1>
    %39 = vector.broadcast %38 : vector<1x256xi1> to vector<8x256xi1>
    %40 = vector.broadcast %cst_19 : f32 to vector<8x256xf32>
    %41 = arith.select %39, %37, %40 : vector<8x256xi1>, vector<8x256xf32>
    %42 = arith.addf %34, %41 : vector<8x256xf32>
    %c2_i32 = arith.constant 2 : i32
    %43 = vector.broadcast %c2_i32 : i32 to vector<1x256xi32>
    %44 = arith.cmpi eq, %25, %43 : vector<1x256xi32>
    %45 = vector.extract_strided_slice %9 {offsets = [16, 0], sizes = [8, 256], strides = [1, 1]} : vector<32x256xf32> to vector<8x256xf32>
    %cst_20 = arith.constant 0.000000e+00 : f32
    %46 = vector.shape_cast %44 : vector<1x256xi1> to vector<1x256xi1>
    %47 = vector.broadcast %46 : vector<1x256xi1> to vector<8x256xi1>
    %48 = vector.broadcast %cst_20 : f32 to vector<8x256xf32>
    %49 = arith.select %47, %45, %48 : vector<8x256xi1>, vector<8x256xf32>
    %50 = arith.addf %42, %49 : vector<8x256xf32>
    %c3_i32 = arith.constant 3 : i32
    %51 = vector.broadcast %c3_i32 : i32 to vector<1x256xi32>
    %52 = arith.cmpi eq, %25, %51 : vector<1x256xi32>
    %53 = vector.extract_strided_slice %9 {offsets = [24, 0], sizes = [8, 256], strides = [1, 1]} : vector<32x256xf32> to vector<8x256xf32>
    %cst_21 = arith.constant 0.000000e+00 : f32
    %54 = vector.shape_cast %52 : vector<1x256xi1> to vector<1x256xi1>
    %55 = vector.broadcast %54 : vector<1x256xi1> to vector<8x256xi1>
    %56 = vector.broadcast %cst_21 : f32 to vector<8x256xf32>
    %57 = arith.select %55, %53, %56 : vector<8x256xi1>, vector<8x256xf32>
    %58 = arith.addf %50, %57 : vector<8x256xf32>
    %59 = arith.truncf %58 : vector<8x256xf32> to vector<8x256xbf16>
    %c0_22 = arith.constant 0 : index
    %c0_23 = arith.constant 0 : index
    %c0_24 = arith.constant 0 : index
    %60 = vector.load %arg7[%c0_22, %c0_23, %c0_24] : memref<1x8x256xbf16, #tpu.memory_space<vmem>>, vector<1x8x256xbf16>
    %61 = vector.shape_cast %60 : vector<1x8x256xbf16> to vector<8x256xbf16>
    %62 = vector.shape_cast %59 : vector<8x256xbf16> to vector<1x8x256xbf16>
    tpu.vector_store %arg7[%c0_22, %c0_23, %c0_24], %62 {strides = array<i32>} : memref<1x8x256xbf16, #tpu.memory_space<vmem>>, vector<1x8x256xbf16>,
    %63 = arith.truncf %15 : vector<4x256xf32> to vector<4x256xbf16>
    %c0_25 = arith.constant 0 : index
    %c0_26 = arith.constant 0 : index
    %c0_27 = arith.constant 0 : index
    %64 = vector.load %arg8[%c0_25, %c0_26, %c0_27] : memref<1x4x256xbf16, #tpu.memory_space<vmem>>, vector<1x4x256xbf16>
    %65 = vector.shape_cast %64 : vector<1x4x256xbf16> to vector<4x256xbf16>
    %66 = vector.shape_cast %63 : vector<4x256xbf16> to vector<1x4x256xbf16>
    tpu.vector_store %arg8[%c0_25, %c0_26, %c0_27], %66 {strides = array<i32>} : memref<1x4x256xbf16, #tpu.memory_space<vmem>>, vector<1x4x256xbf16>,
    %67 = arith.truncf %16 : vector<4x256xf32> to vector<4x256xbf16>
    %c0_28 = arith.constant 0 : index
    %c0_29 = arith.constant 0 : index
    %c0_30 = arith.constant 0 : index
    %68 = vector.load %arg9[%c0_28, %c0_29, %c0_30] : memref<1x4x256xbf16, #tpu.memory_space<vmem>>, vector<1x4x256xbf16>
    %69 = vector.shape_cast %68 : vector<1x4x256xbf16> to vector<4x256xbf16>
    %70 = vector.shape_cast %67 : vector<4x256xbf16> to vector<1x4x256xbf16>
    tpu.vector_store %arg9[%c0_28, %c0_29, %c0_30], %70 {strides = array<i32>} : memref<1x4x256xbf16, #tpu.memory_space<vmem>>, vector<1x4x256xbf16>,
    %cst_31 = arith.constant dense<0.000000e+00> : vector<8xf32>
    %71 = vector.multi_reduction <add>, %58, %cst_31 [1] : vector<8x256xf32> to vector<8xf32>
    %72 = vector.shape_cast %71 : vector<8xf32> to vector<8x1xf32>
    %73 = arith.mulf %58, %58 : vector<8x256xf32>
    %cst_32 = arith.constant dense<0.000000e+00> : vector<8xf32>
    %74 = vector.multi_reduction <add>, %73, %cst_32 [1] : vector<8x256xf32> to vector<8xf32>
    %75 = vector.shape_cast %74 : vector<8xf32> to vector<8x1xf32>
    %c0_33 = arith.constant 0 : index
    %c0_34 = arith.constant 0 : index
    %c0_35 = arith.constant 0 : index
    %76 = vector.load %arg10[%c0_33, %c0_34, %c0_35] : memref<1x16x1xf32, #tpu.memory_space<vmem>>, vector<1x16x1xf32>
    %77 = vector.shape_cast %76 : vector<1x16x1xf32> to vector<16x1xf32>
    %78 = tpu.concatenate %72, %75 in 0 : vector<8x1xf32>, vector<8x1xf32> -> vector<16x1xf32>
    %79 = arith.addf %77, %78 : vector<16x1xf32>
    %c0_36 = arith.constant 0 : index
    %c0_37 = arith.constant 0 : index
    %c0_38 = arith.constant 0 : index
    %80 = vector.load %arg10[%c0_36, %c0_37, %c0_38] : memref<1x16x1xf32, #tpu.memory_space<vmem>>, vector<1x16x1xf32>
    %81 = vector.shape_cast %80 : vector<1x16x1xf32> to vector<16x1xf32>
    %82 = vector.shape_cast %79 : vector<16x1xf32> to vector<1x16x1xf32>
    tpu.vector_store %arg10[%c0_36, %c0_37, %c0_38], %82 {strides = array<i32>} : memref<1x16x1xf32, #tpu.memory_space<vmem>>, vector<1x16x1xf32>,
    return
  }
  func.func @transform_0(%arg0: i32, %arg1: i32) -> (i32, i32, i32) {
    %c0_i32 = arith.constant 0 : i32
    %c0_i32_0 = arith.constant 0 : i32
    return %arg0, %c0_i32, %arg1 : i32, i32, i32
  }
  func.func @transform_1(%arg0: i32, %arg1: i32) -> (i32, i32, i32) {
    %c0_i32 = arith.constant 0 : i32
    %c0_i32_0 = arith.constant 0 : i32
    return %arg0, %c0_i32, %arg1 : i32, i32, i32
  }
  func.func @transform_2(%arg0: i32, %arg1: i32) -> (i32, i32, i32) {
    %c0_i32 = arith.constant 0 : i32
    %c0_i32_0 = arith.constant 0 : i32
    %c0_i32_1 = arith.constant 0 : i32
    return %arg0, %c0_i32, %c0_i32_0 : i32, i32, i32
  }
  func.func @transform_3(%arg0: i32, %arg1: i32) -> (i32, i32) {
    %c0_i32 = arith.constant 0 : i32
    %c0_i32_0 = arith.constant 0 : i32
    %c0_i32_1 = arith.constant 0 : i32
    return %c0_i32, %c0_i32_0 : i32, i32
  }
  func.func @transform_4(%arg0: i32, %arg1: i32) -> (i32, i32) {
    %c0_i32 = arith.constant 0 : i32
    %c0_i32_0 = arith.constant 0 : i32
    %c0_i32_1 = arith.constant 0 : i32
    return %c0_i32, %c0_i32_0 : i32, i32
  }
  func.func @transform_5(%arg0: i32, %arg1: i32) -> (i32, i32, i32) {
    %c0_i32 = arith.constant 0 : i32
    %c0_i32_0 = arith.constant 0 : i32
    return %arg0, %c0_i32, %arg1 : i32, i32, i32
  }
  func.func @transform_6(%arg0: i32, %arg1: i32) -> (i32, i32, i32) {
    %c0_i32 = arith.constant 0 : i32
    %c0_i32_0 = arith.constant 0 : i32
    return %arg0, %c0_i32, %arg1 : i32, i32, i32
  }
  func.func @transform_7(%arg0: i32, %arg1: i32) -> (i32, i32, i32) {
    %c0_i32 = arith.constant 0 : i32
    %c0_i32_0 = arith.constant 0 : i32
    return %arg0, %c0_i32, %arg1 : i32, i32, i32
  }
  func.func @transform_8(%arg0: i32, %arg1: i32) -> (i32, i32, i32) {
    %c0_i32 = arith.constant 0 : i32
    %c0_i32_0 = arith.constant 0 : i32
    %c0_i32_1 = arith.constant 0 : i32
    return %arg0, %c0_i32, %c0_i32_0 : i32, i32, i32
  }
}

</mosaic_0001>

<bundles_post_ra>
// kernel: tpu_custom_call.1
= control target key start
LH: loop header
LB: loop body
LE: loop exit
PB: predicated region body
PF: predicated region fallthrough
CT: control target
= control target key end

     0   :  { %s1716_s0 = inlined_call_operand.vmem [shape: bf16[2,36,256], index: 0, kind: input, shape index: {}]   ;;  %s1717_s1 = inlined_call_operand.vmem [shape: bf16[2,72,256], index: 1, kind: input, shape index: {}]   ;;  %s1718_s2 = inlined_call_operand.hbm [shape: bf16[2,32,36], index: 2, kind: input, shape index: {}]   ;;  %s1719_s3 = inlined_call_operand.vmem [shape: bf16[8,72], index: 3, kind: input, shape index: {}]   ;;  %s1720_s4 = inlined_call_operand.vmem [shape: f32[8,1], index: 4, kind: input, shape index: {}]   ;;  %s1721_s5 = inlined_call_operand.hbm [shape: bf16[2,8,256], index: 5, kind: output, shape index: {0}]   ;;  %s1722_s6 = inlined_call_operand.hbm [shape: bf16[2,4,256], index: 6, kind: output, shape index: {1}]   ;;  %s1723_s7 = inlined_call_operand.hbm [shape: bf16[2,4,256], index: 7, kind: output, shape index: {2}]   ;;  %s1724_s8 = inlined_call_operand.vmem [shape: f32[2,16,1], index: 8, kind: output, shape index: {3}]  }
   0x1   :  { %1728 = sst [smem:[#allocation15_spill]] %s1716_s0 }
   0x2   :  { %1729 = sst [smem:[#allocation16_spill]] %s1717_s1 }
   0x3   :  { %1730 = sst [smem:[#allocation17_spill]] %s1718_s2 }
   0x4   :  { %14 = vsyncpa [#allocation3], 0 }
   0x5   :  { %16 = vsyncpa [#allocation3 + $0x1], 0 }
   0x6   :  { %17 = vsyncpa [#allocation4], 0 }
   0x7   :  { %19 = vsyncpa [#allocation4 + $0x1], 0 }
   0x8   :  { %20 = vsyncpa [#allocation7], 0 }
   0x9   :  { %22 = vsyncpa [#allocation7 + $0x1], 0  ;;  %s1459_s27 = smov 0   ;;  %s1461_s28 = smov 0  }
   0xa   :  { %s1463_s29 = smov 0   ;;  %s1465_s30 = smov 0  }
   0xb   :  { %s1467_s9 = smov 0   ;;  %s1469_s10 = smov 0  }
   0xc LB: > { %1731 = sst [smem:[#allocation12_spill]] %s1399_s9  ;;  %s1490_s11 = sadd.s32 4294967295, %s1403_s10   ;;  %s1403_s10 = sphi %s1469_s10, %s28_s10   ;;  %s1399_s9 = sphi %s1467_s9, %s1746_s9   ;;  %s1395_s30 = sphi %s1465_s30, %s1745_s30   ;;  %s1391_s29 = sphi %s1463_s29, %s1749_s29   ;;  %s1387_s28 = sphi %s1461_s28, %s1748_s28   ;;  %s1383_s27 = sphi %s1459_s27, %s1747_s27  }
   0xd   : > { %s1726_s12 = sadd.s32 4294967294, %s1403_s10   ;;  %s40_s13 = sadd.s32 1, %s1399_s9 }
   0xe   : > { %s103_s14 = sadd.s32 1, %s1391_s29  ;;  %p42_p0 = scmp.ge.s32.totalorder %s40_s13, 2 }
   0xf   : > { %p110_p1 = scmp.ne.s32.totalorder %s1391_s29, %s1387_s28  ;;  %p111_p2 = scmp.eq.s32.totalorder %s1403_s10, 0 }
  0x10   : > { %p116_p3 = scmp.ne.s32.totalorder %s1387_s28, %s1383_s27  ;;  %s1751_s13 = smov (%p42_p0, %s40_s13), 0 }
  0x11   : > { %1732 = sst [smem:[#allocation13_spill]] %s1751_s13  ;;  %p1502_p4 = por %p111_p2, %p110_p1 }
  0x12   : > { %p117_p5 = scmp.eq.s32.totalorder %s1490_s11, 0  ;;  %s100_s16 = ssub.s32 %s1399_s9, %s1751_s13 }
  0x13   : > { %p184_p6 = scmp.eq.s32.totalorder %s1490_s11, 1  ;;  %p101_p7 = scmp.eq.s32.totalorder %s100_s16, 0 }
  0x14   : > { %p1510_p8 = por %p117_p5, %p116_p3  ;;  %p190_p10 = scmp.eq.s32.totalorder %s1726_s12, 1 }
  0x15   : > { %p1514_p9 = por %p184_p6, %p110_p1  ;;  %p1159_p13 = scmp.lt.s32.totalorder %s1403_s10, 2 }
  0x16   : > { %s1521_s19 = scalar_select %p101_p7, %s1391_s29, %s103_s14  }
  0x17   : > { %p1523_p11 = por %p190_p10, %p116_p3  ;;  %s324_s21 = sand.u32 1, %s1391_s29  }
  0x18   : > { %1736 = sst [smem:[#allocation14_spill]] %s1521_s19  ;;  %s1080_s22 = sshll.u32 %s324_s21, 4 }
  0x19   : > { %s1129_s23 = sshll.u32 %s1399_s9, 8  ;;  %s1738_s2 = sld [smem:[#allocation17_spill]] }
  0x1a   : > { %s328_s16 = scalar_lea.vmem [#allocation2], %s1080_s22  ;;  %p1536_p0 = pnand %p1159_p13, %p1502_p4 }
  0x1b   : > { %s335_s13 = sshll.u32 %s328_s16, 4  ;;  %p1083_p1 = scmp.ge.s32.totalorder %s1403_s10, 1  ;;  %s336_s13 = int_to_ptr.vmem [resolvable:$true] %s335_s13 }
  0x1c   : > { %s325_s12 = scalar_lea.sflag [#allocation3], %s324_s21  ;;  %p1241_p2 = pneg %p1536_p0 }
  0x1d   : > { %s1252_s19 = scalar_lea.vmem %s336_s13, 256  ;;  %s1405_s9 = smov [#allocation2]  }
  0x1e   : > { %p1253_p3 = scmp.ne.s32.totalorder %s336_s13, %s1252_s19  ;;  %s1257_s24 = sshll.u32 %s1405_s9, 4  ;;  %s1258_s24 = int_to_ptr.vmem [resolvable:$false] %s1257_s24 }
  0x1f   : > { %s334_s26 = scalar_lea.hbm %s1738_s2, %s1129_s23  ;;  %s1259_s22 = scalar_lea.vmem %s1258_s24, 512 }
  0x20   : > { %p1255_p5 = pnand %p1253_p3, %p1241_p2  ;;  %p1260_p7 = scmp.lt.s32.totalorder %s336_s13, %s1258_s24 }
  0x21   : > { %p1261_p10 = scmp.lt.s32.totalorder %s1259_s22, %s1252_s19 }
  0x22   : > { %p1256_p6 = pneg %p1255_p5 }
  0x23   : > { %p1262_p12 = por %p1261_p10, %p1260_p7 }
  0x25   : > { %p1263_p4 = pnand %p1262_p12, %p1256_p6 }
  0x27   : > { %1266 = shalt.err (!%p1263_p4)
}
  0x28   : > { %s1406_s15 = smov 64   ;;  %s1407_s21 = smov 4  }
  0x29   : > { %1148 = dma.hbm_to_vmem [thread:$0]  (!%p1536_p0), %s334_s26, 256, %s336_s13, %s325_s12, %s1406_s15, %s1406_s15, %s1407_s21  }
  0x2a   : > { %p343_p13 = scmp.lt.s32.totalorder %s1403_s10, 3 }
  0x2c   : > { %p344_p2 = pnand %p1083_p1, %p343_p13 }
  0x2d   : > { %s1549_s9 = sand.u32 (!%p344_p2), 1, %s1387_s28  }
  0x2e   : > { %347 = sbr.rel (%p344_p2) target bundleno = 460 (0x1cc), region = 40  ;;  %s1084_s19 = sshll.u32 (!%p344_p2), %s1549_s9, 4 }
  0x2f   : > { %s350_s23 = scalar_lea.sflag (!%p344_p2), [#allocation3], %s1549_s9  ;;  %s1553_s25 = scalar_lea.vmem (!%p344_p2), [#allocation2], %s1084_s19 }
  0x33   : > { %1370 = dma.done.wait (%p1510_p8), %s350_s23, 256  }
  0x34   : > { %1372 = vsyncadd (%p1510_p8), %s350_s23, 4294967040  ;;  %p420_p12 = scmp.lt.s32.totalorder %s1395_s30, 1  ;;  %v1408_v0 = vmov 0   ;;  %s1740_s1 = sld [smem:[#allocation16_spill]]  ;;  %vm631_vm0 = vcmask 1043456   ;;  %vm515_vm1 = vcmask 1041408   ;;  %v693_v26 = vlaneseq }
  0x35   : > { %670 = vmatprep.mubr.bf16.mxu1 %v1408_v0  ;;  %554 = vmatprep.mubr.bf16.mxu0 %v1408_v0  ;;  %s1741_s0 = sld [smem:[#allocation15_spill]]  ;;  %v576_v17 = vld [vmem:[%s1720_s4] sm:$0xff]  ;;  %vm508_vm2 = vcmask 293888   ;;  %vm627_vm3 = vcmask 588800   ;;  %v1238_v24 = vld [vmem:[%s1553_s25 + $0x8] sm:$0xff]   ;;  %vm452_vm4 = vcmask 7168  }
  0x36   : > { %s1561_s12 = scalar_select %p420_p12, %s1395_s30, 1  ;;  %1214 = vset.pattern.permute.xlu0 %v1408_v0  ;;  %v1237_v22 = vld [vmem:[%s1553_s25] sm:$0xff]   ;;  %v1409_v25 = vmov 0.0   ;;  %v1410_v27 = vmov 1983009808   ;;  %v694_v30 = vshrl.u32 %v693_v26, 7 }
  0x37   : > { %579 = vperm.xlu0 %1214, %v576_v17   ;;  %v575_v23 = vld [vmem:[%s1719_s3] sm:$0xf]  ;;  %v774_v28 = vunpack.c.l.s4 %v1410_v27  ;;  %s1086_s25 = sshll.u32 %s1549_s9, 2  ;;  %s1085_s22 = sshll.u32 %s1549_s9, 3 }
  0x38   : > { %s1136_s13 = smul.u32 72, %s1561_s12  ;;  %s1130_s26 = sshll.u32 %s1561_s12, 4 }
  0x39   : > { %s1135_s17 = smul.u32 40, %s1561_s12  ;;  %v775_v31 = vunpack.c.0.s8 %v774_v28  ;;  %s1605_s12 = scalar_lea.vmem [#allocation6], %s1086_s25 }
  0x3a   : > { %s1567_s14 = scalar_lea.vmem %s1740_s1, %s1136_s13  ;;  %s1608_s24 = scalar_lea.vmem [#allocation8], %s1086_s25 }
  0x3b   : > { %v468_v1 = vld [vmem:[%s1567_s14 + $0x40] sm:$0xff]  ;;  %v1217_v4 = vld [vmem:[%s1567_s14 + $0x34] ss:$8 sps:$4 sm:$0xff]   ;;  %s427_s15 = scalar_lea.vmem %s1741_s0, %s1135_s17  ;;  %v1219_v6 = vld [vmem:[%s1567_s14 + $0x30] ss:$8 sps:$4 sm:$0xff]   ;;  %s1596_s17 = scalar_lea.vmem %s1724_s8, %s1130_s26  ;;  %v778_v37 = vsub.s32 %v775_v31, %v694_v30 }
  0x3c   : > { %v1112_v2 = vcombine.high %v468_v1, %v468_v1  ;;  %v1111_v3 = vcombine.low %v468_v1, %v468_v1  ;;  %v1220_v7 = vld [vmem:[%s1567_s14 + $0x24] ss:$8 sps:$4 sm:$0xff]   ;;  %v1231_v11 = vld [vmem:[%s427_s15 + $0x14] ss:$8 sps:$4 sm:$0xff]   ;;  %v1222_v12 = vld [vmem:[%s1567_s14 + $0x20] ss:$8 sps:$4 sm:$0xff]  }
  0x3d   : > { %v459_v8 = vld [vmem:[%s427_s15 + $0x20] sm:$0x33]  ;;  %v1223_v13 = vld [vmem:[%s1567_s14 + $0x14] ss:$8 sps:$4 sm:$0xff]   ;;  %v1233_v15 = vld [vmem:[%s427_s15 + $0x10] ss:$8 sps:$4 sm:$0xff]  }
  0x3e   : > { %1113 = vmatprep.subr.msk.bf16.mxu1 %vm631_vm0, %v1112_v2  ;;  %v633_v5 = vsel %vm631_vm0, %v1111_v3, 0  ;;  %v1099_v9 = vcombine.high %v459_v8, %v459_v8  ;;  %v1098_v10 = vcombine.low %v459_v8, %v459_v8  ;;  %v1234_v16 = vld [vmem:[%s427_s15 + $0x4] ss:$8 sps:$4 sm:$0xff]   ;;  %v1225_v18 = vld [vmem:[%s1567_s14 + $0x10] ss:$8 sps:$4 sm:$0xff]   ;;  %453 = vst.msk [vmem:[%s1596_s17] sm:$0xff] %vm452_vm4, %v1409_v25 }
  0x3f   : > { %645 = vmatpush1.bf16.msra.mxu1 %v633_v5  ;;  %v1226_v19 = vld [vmem:[%s1567_s14 + $0x4] ss:$8 sps:$4 sm:$0xff]   ;;  %v1236_v20 = vld [vmem:[%s427_s15] ss:$8 sps:$4 sm:$0xff]   ;;  %454 = vst.msk [vmem:[%s1596_s17 + $0x8] sm:$0xff] %vm452_vm4, %v1409_v25  ;;  %s1614_s15 = scalar_lea.vmem [#allocation5], %s1085_s22 }
  0x40   : > { %646 = vmatprep.subr.bf16.mxu1 %v1217_v4  ;;  %1100 = vmatprep.subr.msk.bf16.mxu0 %vm515_vm1, %v1099_v9  ;;  %v517_v14 = vsel %vm515_vm1, %v1098_v10, 0  ;;  %v1228_v21 = vld [vmem:[%s1567_s14] ss:$8 sps:$4 sm:$0xff]   ;;  %s805_s21 = sand.u32 1, %s1490_s11   ;;  %s1133_s19 = sshll.u32 %s1395_s30, 6 }
  0x41   : > { %533 = vmatpush1.bf16.msra.mxu0 %v517_v14  ;;  %s1622_s26 = scalar_lea.hbm %s1722_s6, %s1133_s19  ;;  %s848_s16 = sshll.u32 %s1605_s12, 4  ;;  %s849_s16 = int_to_ptr.vmem [resolvable:$true] %s848_s16 }
  0x42   : > { %534 = vmatprep.subr.bf16.mxu0 %v1231_v11  ;;  %s1628_s0 = scalar_lea.hbm %s1723_s7, %s1133_s19  ;;  %s1630_s1 = scalar_lea.sflag [#allocation7], %s805_s21 }
  0x43   : > { %647 = vmatpush1.bf16.msra.mxu1 %v1219_v6  ;;  %s1267_s22 = scalar_lea.vmem %s849_s16, 64  ;;  %s1411_s11 = smov [#allocation6]  }
  0x44   : > { %648 = vmatprep.subr.bf16.mxu1 %v1220_v7  ;;  %p1268_p8 = scmp.ne.s32.totalorder %s849_s16, %s1267_s22  ;;  %s1271_s2 = sshll.u32 %s1411_s11, 4  ;;  %s1272_s2 = int_to_ptr.vmem [resolvable:$false] %s1271_s2 }
  0x45   : > { %535 = vmatpush1.bf16.msra.mxu0 %v1233_v15  ;;  %s1273_s23 = scalar_lea.vmem %s1272_s2, 128  ;;  %p1274_p3 = scmp.lt.s32.totalorder %s849_s16, %s1272_s2 }
  0x46   : > { %536 = vmatprep.subr.bf16.mxu0 %v1234_v16  ;;  %p1269_p0 = pnand %p1268_p8, %p1514_p9  ;;  %p1275_p5 = scmp.lt.s32.totalorder %s1273_s23, %s1267_s22 }
  0x47   : > { %649 = vmatpush1.bf16.msra.mxu1 %v1222_v12 }
  0x48   : > { %650 = vmatprep.subr.bf16.mxu1 %v1223_v13  ;;  %p1270_p1 = pneg %p1269_p0  ;;  %p1276_p6 = por %p1275_p5, %p1274_p3 }
  0x49   : > { %537 = vmatpush1.bf16.msra.mxu0 %v1236_v20 }
  0x4a   : > { %p1277_p7 = pnand %p1276_p6, %p1270_p1 }
  0x4b   : > { %651 = vmatpush1.bf16.msra.mxu1 %v1225_v18 }
  0x4c   : > { %652 = vmatprep.subr.bf16.mxu1 %v1226_v19  ;;  %1101 = vmatmul.mubr.msk.bf16.vlgmr.msra.gmra.mxu0 %vm508_vm2, %v1237_v22 }
  0x4d   : > { %564 = vmatprep.mubr.bf16.mxu0 %v1408_v0 }
  0x4f   : > { %653 = vmatpush1.bf16.msra.mxu1 %v1228_v21 }
  0x52   : > { %1114 = vmatmul.mubr.msk.bf16.vlgmr.msra.gmra.mxu1 %vm627_vm3, %v575_v23 }
  0x54   : > { %1102 = vmatmul.mubr.msk.bf16.gmra.mxu0 %vm508_vm2, %v1238_v24 }
  0xb2   : > { %v580_v29 = vpop.permute.xlu0 %579 }
 0x10c   : > { %v556_v49 = vpop.f32.mrf.mxu0 }
 0x10e   : > { %v558_v54 = vpop.f32.mrf.mxu0 }
 0x110   : > { %v560_v59 = vpop.f32.mrf.mxu0 }
 0x112   : > { %v672_v32 = vpop.f32.mrf.mxu1  ;;  %v562_v1 = vpop.f32.mrf.mxu0 }
 0x113   : > { %v673_v33 = vadd.f32 %v672_v32, %v580_v29 }
 0x114   : > { %v674_v34 = vpop.f32.mrf.mxu1  ;;  %v566_v6 = vpop.f32.mrf.mxu0 }
 0x115   : > { %v679_v35 = vsel %vm631_vm0, %v673_v33, -inf  ;;  %v675_v36 = vadd.f32 %v674_v34, %v580_v29 }
 0x116   : > { %v680_v38 = vrot.slane %v679_v35, 4  ;;  %v676_v39 = vpop.f32.mrf.mxu1  ;;  %v568_v11 = vpop.f32.mrf.mxu0 }
 0x117   : > { %v686_v40 = vsel %vm631_vm0, %v675_v36, -inf  ;;  %v1116_v41 = vpack.c.bf16 %v675_v36, %v673_v33 }
 0x118   : > { %v681_v42 = vmax.f32 %v679_v35, %v680_v38  ;;  %v687_v43 = vrot.slane %v686_v40, 4  ;;  %v677_v44 = vpop.f32.mrf.mxu1  ;;  %v570_v17 = vpop.f32.mrf.mxu0 }
 0x119   : > { %v779_v45 = vrot.slane %v1116_v41, %v778_v37  ;;  %1117 = vst.sshfl [vmem:[%s1605_s12] sm:$0x33 pattern:$0x76325410] %v1116_v41 }
 0x11a   : > { %v682_v46 = vrot.slane %v681_v42, 2  ;;  %v688_v47 = vmax.f32 %v686_v40, %v687_v43  ;;  %v572_v27 = vpop.f32.mrf.mxu0 }
 0x11b   : > { %v782_v48 = vcombine.high %v779_v45, %v779_v45 }
 0x11c   : > { %v683_v50 = vmax.f32 %v681_v42, %v682_v46  ;;  %v689_v51 = vrot.slane %v688_v47, 2 }
 0x11d   : > { %784 = vst [vmem:[%s1608_s24] sm:$0xf] %v782_v48 }
 0x11e   : > { %v684_v52 = vrot.slane %v683_v50, 1  ;;  %v690_v53 = vmax.f32 %v688_v47, %v689_v51 }
 0x120   : > { %v685_v55 = vmax.f32 %v683_v50, %v684_v52  ;;  %v691_v56 = vrot.slane %v690_v53, 1 }
 0x122   : > { %vm695_vm5 = vcmp.ge.f32.partialorder %v673_v33, %v685_v55  ;;  %v692_v57 = vmax.f32 %v690_v53, %v691_v56 }
 0x123   : > { %v697_v58 = vsel %vm695_vm5, %v694_v30, 4 }
 0x124   : > { %v699_v60 = vsel %vm631_vm0, %v697_v58, 2147483647  ;;  %vm696_vm6 = vcmp.ge.f32.partialorder %v675_v36, %v692_v57 }
 0x125   : > { %v700_v61 = vrot.slane %v699_v60, 4  ;;  %v698_v62 = vsel %vm696_vm6, %v694_v30, 4 }
 0x126   : > { %v709_v63 = vsel %vm631_vm0, %v698_v62, 2147483647 }
 0x127   : > { %vm701_vm7 = vcmp.lt.s32.totalorder %v699_v60, %v700_v61  ;;  %v710_v0 = vrot.slane %v709_v63, 4 }
 0x128   : > { %v702_v2 = vsel %vm701_vm7, %v699_v60, %v700_v61 }
 0x129   : > { %v703_v3 = vrot.slane %v702_v2, 2  ;;  %vm711_vm8 = vcmp.lt.s32.totalorder %v709_v63, %v710_v0 }
 0x12a   : > { %v712_v4 = vsel %vm711_vm8, %v709_v63, %v710_v0 }
 0x12b   : > { %v713_v5 = vrot.slane %v712_v4, 2  ;;  %vm704_vm9 = vcmp.lt.s32.totalorder %v702_v2, %v703_v3 }
 0x12c   : > { %v705_v7 = vsel %vm704_vm9, %v702_v2, %v703_v3 }
 0x12d   : > { %v706_v8 = vrot.slane %v705_v7, 1  ;;  %vm714_vm10 = vcmp.lt.s32.totalorder %v712_v4, %v713_v5 }
 0x12e   : > { %v715_v9 = vsel %vm714_vm10, %v712_v4, %v713_v5 }
 0x12f   : > { %vm707_vm11 = vcmp.lt.s32.totalorder %v705_v7, %v706_v8  ;;  %v716_v10 = vrot.slane %v715_v9, 1 }
 0x130   : > { %v708_v12 = vsel %vm707_vm11, %v705_v7, %v706_v8 }
 0x131   : > { %vm719_vm12 = vcmp.eq.s32.totalorder %v708_v12, 0  ;;  %vm717_vm13 = vcmp.lt.s32.totalorder %v715_v9, %v716_v10  ;;  %vm729_vm14 = vcmp.eq.s32.totalorder %v708_v12, 1  ;;  %vm739_vm15 = vcmp.eq.s32.totalorder %v708_v12, 2 }
 0x132   : > { %v725_v13 = vsel %vm719_vm12, %v556_v49, 0.0  ;;  %v718_v14 = vsel %vm717_vm13, %v715_v9, %v716_v10  ;;  %v735_v15 = vsel %vm729_vm14, %v560_v59, 0.0  ;;  %v745_v20 = vsel %vm739_vm15, %v566_v6, 0.0 }
 0x133   : > { %vm720_vm0 = vcmp.eq.s32.totalorder %v718_v14, 0  ;;  %v737_v16 = vadd.f32 %v735_v15, %v725_v13  ;;  %vm730_vm1 = vcmp.eq.s32.totalorder %v718_v14, 1  ;;  %vm740_vm2 = vcmp.eq.s32.totalorder %v718_v14, 2 }
 0x134   : > { %v726_v18 = vsel %vm720_vm0, %v558_v54, 0.0  ;;  %v736_v19 = vsel %vm730_vm1, %v562_v1, 0.0  ;;  %vm749_vm3 = vcmp.eq.s32.totalorder %v708_v12, 3  ;;  %vm750_vm5 = vcmp.eq.s32.totalorder %v718_v14, 3 }
 0x135   : > { %v738_v21 = vadd.f32 %v736_v19, %v726_v18  ;;  %v747_v22 = vadd.f32 %v745_v20, %v737_v16  ;;  %v746_v23 = vsel %vm740_vm2, %v568_v11, 0.0  ;;  %v755_v24 = vsel %vm749_vm3, %v570_v17, 0.0 }
 0x136   : > { %v756_v28 = vsel %vm750_vm5, %v572_v27, 0.0 }
 0x137   : > { %v748_v25 = vadd.f32 %v746_v23, %v738_v21  ;;  %v757_v26 = vadd.f32 %v755_v24, %v747_v22 }
 0x139   : > { %v758_v29 = vadd.f32 %v756_v28, %v748_v25  ;;  %v788_v32 = vmul.f32 %v757_v26, %v757_v26 }
 0x13b   : > { %v1131_v30 = vpack.c.bf16 %v758_v29, %v757_v26  ;;  %v785_v31 = vadd.f32 %v758_v29, %v757_v26  ;;  %v789_v33 = vmul.f32 %v758_v29, %v758_v29 }
 0x13d   : > { %786 = vadd.xlane.f32.xlu0 %v785_v31  ;;  %v790_v34 = vadd.f32 %v789_v33, %v788_v32  ;;  %767 = vst [vmem:[%s1614_s15] sm:$0xff] %v1131_v30 }
 0x13f   : > { %791 = vadd.xlane.f32.xlu1 %v790_v34 }
 0x140   : > { %1280 = shalt.err (!%p1277_p7)
}
 0x141   : > { %s1281_s12 = scalar_lea.hbm %s1622_s26, 64  ;;  %s1285_s13 = scalar_lea.hbm %s1722_s6, 128 }
 0x142   : > { %p1282_p10 = scmp.ne.s32.totalorder %s1622_s26, %s1281_s12  ;;  %p1286_p2 = scmp.lt.s32.totalorder %s1622_s26, %s1722_s6 }
 0x143   : > { %p1287_p12 = scmp.lt.s32.totalorder %s1285_s13, %s1281_s12 }
 0x144   : > { %p1283_p4 = pnand %p1282_p10, %p1514_p9 }
 0x145   : > { %p1288_p8 = por %p1287_p12, %p1286_p2 }
 0x146   : > { %p1284_p13 = pneg %p1283_p4 }
 0x148   : > { %p1289_p0 = pnand %p1288_p8, %p1284_p13 }
 0x14a   : > { %1292 = shalt.err (!%p1289_p0)
}
 0x14b   : > { %1140 = dma.vmem_to_hbm [thread:$0]  (%p1514_p9), %s849_s16, 64, %s1622_s26, %s1630_s1  }
 0x14c   : > { %s1132_s2 = sshll.u32 %s1395_s30, 7  ;;  %s832_s22 = sshll.u32 %s1614_s15, 4  ;;  %s833_s22 = int_to_ptr.vmem [resolvable:$true] %s832_s22 }
 0x14d   : > { %s830_s21 = scalar_lea.hbm %s1721_s5, %s1132_s2  ;;  %s801_s12 = scalar_lea.sflag [#allocation4], %s1549_s9 }
 0x14e   : > { %s1293_s19 = scalar_lea.vmem %s833_s22, 128  ;;  %s1412_s13 = smov [#allocation5]  }
 0x14f   : > { %p1294_p1 = scmp.ne.s32.totalorder %s833_s22, %s1293_s19  ;;  %s1297_s14 = sshll.u32 %s1412_s13, 4  ;;  %s1298_s14 = int_to_ptr.vmem [resolvable:$false] %s1297_s14 }
 0x150   : > { %s1299_s25 = scalar_lea.vmem %s1298_s14, 256  ;;  %p1300_p6 = scmp.lt.s32.totalorder %s833_s22, %s1298_s14 }
 0x151   : > { %p1295_p3 = pnand %p1294_p1, %p1514_p9  ;;  %p1301_p7 = scmp.lt.s32.totalorder %s1299_s25, %s1293_s19 }
 0x153   : > { %p1296_p5 = pneg %p1295_p3  ;;  %p1302_p10 = por %p1301_p7, %p1300_p6 }
 0x155   : > { %p1303_p4 = pnand %p1302_p10, %p1296_p5 }
 0x157   : > { %1306 = shalt.err (!%p1303_p4)
}
 0x158   : > { %s1307_s30 = scalar_lea.hbm %s830_s21, 128  ;;  %s1311_s26 = scalar_lea.hbm %s1721_s5, 256 }
 0x159   : > { %p1308_p13 = scmp.ne.s32.totalorder %s830_s21, %s1307_s30  ;;  %p1312_p8 = scmp.lt.s32.totalorder %s830_s21, %s1721_s5 }
 0x15a   : > { %p1313_p0 = scmp.lt.s32.totalorder %s1311_s26, %s1307_s30 }
 0x15b   : > { %p1309_p2 = pnand %p1308_p13, %p1514_p9 }
 0x15c   : > { %p1314_p1 = por %p1313_p0, %p1312_p8 }
 0x15d   : > { %p1310_p12 = pneg %p1309_p2 }
 0x15f   : > { %p1315_p3 = pnand %p1314_p1, %p1310_p12 }
 0x161   : > { %1318 = shalt.err (!%p1315_p3)
}
 0x162   : > { %1139 = dma.vmem_to_hbm [thread:$0]  (%p1514_p9), %s833_s22, 128, %s830_s21, %s801_s12  }
 0x163   : > { %s864_s11 = sshll.u32 %s1608_s24, 4  ;;  %s1413_s19 = smov [#allocation8]   ;;  %s865_s11 = int_to_ptr.vmem [resolvable:$true] %s864_s11 }
 0x164   : > { %s1319_s23 = scalar_lea.vmem %s865_s11, 64  ;;  %s1323_s13 = sshll.u32 %s1413_s19, 4  ;;  %s1324_s13 = int_to_ptr.vmem [resolvable:$false] %s1323_s13 }
 0x165   : > { %p1320_p5 = scmp.ne.s32.totalorder %s865_s11, %s1319_s23  ;;  %s1325_s14 = scalar_lea.vmem %s1324_s13, 128 }
 0x166   : > { %p1326_p10 = scmp.lt.s32.totalorder %s865_s11, %s1324_s13  ;;  %p1327_p4 = scmp.lt.s32.totalorder %s1325_s14, %s1319_s23 }
 0x167   : > { %p1321_p6 = pnand %p1320_p5, %p1514_p9 }
 0x168   : > { %p1328_p13 = por %p1327_p4, %p1326_p10 }
 0x169   : > { %p1322_p7 = pneg %p1321_p6 }
 0x16b   : > { %p1329_p2 = pnand %p1328_p13, %p1322_p7 }
 0x16d   : > { %1332 = shalt.err (!%p1329_p2)
}
 0x16e   : > { %s1333_s24 = scalar_lea.hbm %s1628_s0, 64  ;;  %s1337_s12 = scalar_lea.hbm %s1723_s7, 128 }
 0x16f   : > { %p1334_p12 = scmp.ne.s32.totalorder %s1628_s0, %s1333_s24  ;;  %p1338_p1 = scmp.lt.s32.totalorder %s1628_s0, %s1723_s7 }
 0x170   : > { %p1339_p3 = scmp.lt.s32.totalorder %s1337_s12, %s1333_s24 }
 0x171   : > { %p1335_p8 = pnand %p1334_p12, %p1514_p9 }
 0x172   : > { %p1340_p5 = por %p1339_p3, %p1338_p1 }
 0x173   : > { %p1336_p0 = pneg %p1335_p8 }
 0x175   : > { %p1341_p6 = pnand %p1340_p5, %p1336_p0 }
 0x177   : > { %1344 = shalt.err (!%p1341_p6)
}
 0x178   : > { %1141 = dma.vmem_to_hbm [thread:$0]  (%p1514_p9), %s865_s11, 64, %s1628_s0, %s1630_s1   ;;  %v793_v35 = vld [vmem:[%s1596_s17] sm:$0xff]  ;;  %v794_v37 = vld [vmem:[%s1596_s17 + $0x8] sm:$0xff] }
 0x1c6   : > { %v787_v36 = vpop.xlane.xlu0 %786 }
 0x1c7   : > { %v795_v38 = vadd.f32 %v793_v35, %v787_v36 }
 0x1c8   : > { %v792_v39 = vpop.xlane.xlu1 %791 }
 0x1c9   : > { %798 = vst.msk [vmem:[%s1596_s17] sm:$0xff] %vm452_vm4, %v795_v38  ;;  %v796_v40 = vadd.f32 %v794_v37, %v792_v39 }
 0x1cb   : > { %799 = vst.msk [vmem:[%s1596_s17 + $0x8] sm:$0xff] %vm452_vm4, %v796_v40 }
 0x1cc PF: > { %s879_s18 = sand.u32 1, %s1383_s27   ;;  %p1742_p7 = scmp.ge.s32.totalorder %s1403_s10, 2 }
 0x1cd   : > { %s880_s0 = scalar_lea.sflag [#allocation4], %s879_s18 }
 0x1ce   : > { %p1150_p10 = pnand %p1742_p7, %p1523_p11 }
 0x1d0   : > { %p1151_p4 = pneg %p1150_p10 }
 0x1d2   : > { %1374 = dma.done.wait (%p1151_p4), %s880_s0, 128  }
 0x1d3   : > { %1376 = vsyncadd (%p1151_p4), %s880_s0, 4294967168  ;;  %s1743_s1 = sadd.s32 4294967294, %s1403_s10  }
 0x1d4   : > { %s888_s9 = sand.u32 1, %s1743_s1  }
 0x1d5   : > { %s889_s15 = scalar_lea.sflag [#allocation7], %s888_s9 }
 0x1d6   : > { %1378 = dma.done.wait (%p1151_p4), %s889_s15, 128  }
 0x1d7   : > { %1380 = vsyncadd (%p1151_p4), %s889_s15, 4294967168  ;;  %s28_s10 = sadd.s32 1, %s1403_s10   ;;  %s1744_s17 = sld [smem:[#allocation14_spill]] }
 0x1d8   : > { %p25_p9 = scmp.ge.s32.totalorder %s28_s10, 4   ;;  %s1745_s30 = sld [smem:[#allocation12_spill]] }
 0x1d9   : > { %s1746_s9 = sld [smem:[#allocation13_spill]]  ;;  %s1747_s27 = smov %s1387_s28 }
 0x1da   : > { %s1748_s28 = smov %s1391_s29  ;;  %27 = sbr.rel (!%p25_p9) target bundleno = 12 (0xc), region = 139 }
 0x1dd   : > { %s1749_s29 = smov %s1744_s17 }
 0x1df   :  { %911 = vsyncpa [#allocation3], 1 }
 0x1e0   :  { %913 = vsyncpa [#allocation3 + $0x1], 1 }
 0x1e1   :  { %914 = vsyncpa [#allocation4], 1 }
 0x1e2   :  { %916 = vsyncpa [#allocation4 + $0x1], 1 }
 0x1e3   :  { %917 = vsyncpa [#allocation7], 1 }
 0x1e4   :  { %919 = vsyncpa [#allocation7 + $0x1], 1 }

</bundles_post_ra>
